<compile_context>
chip_gen: v6e
topology: v6e:2x2x1
jax: 0.10.0
libtpu: 0.0.40
codegen_flags: <defaults>
</compile_context>

<pallas_src>
import functools

import jax
import jax.numpy as jnp
from jax.experimental import pallas as pl
from jax.experimental.pallas import tpu as pltpu

IN_FEATURES = 28 * 28     # 784 (= 6*128 + 16; kept un-padded: x is the dominant HBM stream)
LANE = 128                # padded lane width for every hidden/output layer
OUT_FEATURES = 10
MAX_TILE_B = 1024         # preferred batch tile (large tiles ~= HBM roofline; see _pick_tile_b)


def mlp_kernel(x_ref, w1_ref, b1_ref, w2_ref, b2_ref, w3_ref, b3_ref, o_ref):
    # Fused 3-layer MLP on one (tile_b, 784) batch tile: intermediates never touch HBM.
    # bf16 operands on the MXU, f32 accumulation; the input cast, bias adds and ReLUs are
    # VPU work that hides under the DMA critical path.
    x = x_ref[...].astype(jnp.bfloat16)                 # in-kernel cast: no wrapper HBM pass
    h1 = jnp.dot(x, w1_ref[...], preferred_element_type=jnp.float32) + b1_ref[...]
    h1 = jnp.maximum(h1, 0.0).astype(jnp.bfloat16)
    h2 = jnp.dot(h1, w2_ref[...], preferred_element_type=jnp.float32) + b2_ref[...]
    h2 = jnp.maximum(h2, 0.0).astype(jnp.bfloat16)
    h3 = jnp.dot(h2, w3_ref[...], preferred_element_type=jnp.float32) + b3_ref[...]
    h3 = jnp.maximum(h3, 0.0)                           # module applies ReLU after fc3 too
    o_ref[...] = h3.astype(o_ref.dtype)                 # lane-dense (tile_b, 128) bf16 store


def _round_up(x, m):
    return (x + m - 1) // m * m


def _pick_tile_b(batch):
    # Aim for >= 4 grid steps (>= 2 per TensorCore on v7x with "parallel" sharding) so the
    # input/output DMAs stay double-buffered, while keeping tiles as large as possible
    # (per-step overhead ~0.35 us; small tiles leave HBM roofline unclaimed).  Multiple of
    # 8 sublanes.  Capped at MAX_TILE_B so f32 x tiles stay comfortably inside scoped VMEM.
    return max(8, min(MAX_TILE_B, _round_up(pl.cdiv(batch, 4), 8)))


@functools.partial(jax.jit, static_argnames=("tile_b",))
def mlp_forward(x, w1, b1, w2, b2, w3, b3, *, tile_b=None):
    """x: (B, 784), any float dtype (bf16 input halves HBM read traffic).
    Params are the padded/bf16 versions from prepare_params."""
    B = x.shape[0]
    if tile_b is None:
        tile_b = _pick_tile_b(B)
    n_tiles = pl.cdiv(B, tile_b)      # ragged final block is masked by Pallas (no jnp.pad copy)

    # Weights/biases: whole-array blocks, constant index map (DMA'd once, resident in VMEM),
    # single-buffered so the pipeline does not reserve 2x VMEM for constant operands.
    def resident(a):
        return pl.BlockSpec(a.shape, lambda i: (0,) * a.ndim, pipeline_mode=pl.Buffered(1))

    x_bytes = x.dtype.itemsize
    weight_bytes = sum(int(a.size) * a.dtype.itemsize for a in (w1, b1, w2, b2, w3, b3))
    cost = pl.CostEstimate(
        flops=2 * B * (IN_FEATURES * LANE + LANE * LANE + LANE * LANE),
        transcendentals=0,
        bytes_accessed=B * (IN_FEATURES * x_bytes + LANE * 2) + weight_bytes,
    )

    out = pl.pallas_call(
        mlp_kernel,
        out_shape=jax.ShapeDtypeStruct((B, LANE), jnp.bfloat16),   # bf16 output stream
        grid=(n_tiles,),
        in_specs=[
            pl.BlockSpec((tile_b, IN_FEATURES), lambda i: (i, 0)),  # x: batch-tiled, pipelined
            resident(w1), resident(b1),
            resident(w2), resident(b2),
            resident(w3), resident(b3),
        ],
        out_specs=pl.BlockSpec((tile_b, LANE), lambda i: (i, 0)),   # lane-dense output tiles
        compiler_params=pltpu.CompilerParams(
            # Batch tiles are independent: shard the grid across both TensorCores on v7x
            # (harmless no-op on single-core v5e/v6e).
            dimension_semantics=("parallel",),
            # Covers v5e's 16 MiB default scoped-VMEM limit with f32 x tiles at tile_b=1024;
            # well inside v7x's 64 MiB physical VMEM.
            vmem_limit_bytes=32 * 1024 * 1024,
        ),
        cost_estimate=cost,
    )(x, w1, b1, w2, b2, w3, b3)
    # Slice back to the 10 real logits; tiny (B, 10) cast to f32 for the caller.
    return out[:, :OUT_FEATURES].astype(jnp.float32)


def init_params(key):
    """PyTorch nn.Linear default init (uniform +-1/sqrt(fan_in)), original shapes."""
    def linear(key, fan_in, fan_out):
        kw, kb = jax.random.split(key)
        bound = 1.0 / jnp.sqrt(fan_in)
        w = jax.random.uniform(kw, (fan_in, fan_out), jnp.float32, -bound, bound)
        b = jax.random.uniform(kb, (1, fan_out), jnp.float32, -bound, bound)
        return w, b

    k1, k2, k3 = jax.random.split(key, 3)
    w1, b1 = linear(k1, IN_FEATURES, 25)
    w2, b2 = linear(k2, 25, 10)
    w3, b3 = linear(k3, 10, 10)
    return w1, b1, w2, b2, w3, b3


def prepare_params(w1, b1, w2, b2, w3, b3):
    """Zero-pad every layer to lane width 128 (exact under ReLU since padded bias entries
    are zero) and cast weights to bf16; biases stay f32 and are added onto the f32 MXU
    accumulator."""
    def pad_w(w, rows, cols):
        w = jnp.pad(w, ((0, rows - w.shape[0]), (0, cols - w.shape[1])))
        return w.astype(jnp.bfloat16)

    def pad_b(b, cols):
        return jnp.pad(b, ((0, 0), (0, cols - b.shape[1]))).astype(jnp.float32)

    return (
        pad_w(w1, IN_FEATURES, LANE), pad_b(b1, LANE),
        pad_w(w2, LANE, LANE),        pad_b(b2, LANE),
        pad_w(w3, LANE, LANE),        pad_b(b3, LANE),
    )


def mlp_reference(x, w1, b1, w2, b2, w3, b3):
    """Pure-JAX reference with the same bf16 operands / f32 accumulation / bf16 output
    rounding as the kernel."""
    h = x.astype(jnp.bfloat16)
    h = jnp.maximum(jnp.dot(h, w1, preferred_element_type=jnp.float32) + b1, 0.0)
    h = jnp.maximum(jnp.dot(h.astype(jnp.bfloat16), w2,
                            preferred_element_type=jnp.float32) + b2, 0.0)
    h = jnp.maximum(jnp.dot(h.astype(jnp.bfloat16), w3,
                            preferred_element_type=jnp.float32) + b3, 0.0)
    h = h.astype(jnp.bfloat16).astype(jnp.float32)      # match the kernel's bf16 output store
    return h[:, :OUT_FEATURES]


if __name__ == "__main__":
    key = jax.random.PRNGKey(0)
    kx, kp = jax.random.split(key)

    B = 512  # -> tile_b = 128, 4 grid steps (2 per TensorCore on v7x): exercises the pipeline
    x = jax.random.normal(kx, (B, IN_FEATURES), jnp.float32)
    params = prepare_params(*init_params(kp))

    out = jax.block_until_ready(mlp_forward(x, *params))

    ref = mlp_reference(x, *params)
    assert out.shape == (B, OUT_FEATURES), out.shape
    assert jnp.allclose(out, ref, atol=1e-2, rtol=1e-2), float(jnp.max(jnp.abs(out - ref)))

    print("KERNEL_OK")
</pallas_src>

<mosaic_0001>
module attributes {stable_mosaic.version = 11 : i64} {
  func.func @mlp_kernel(%arg0: i32, %arg1: memref<128x784xf32, #tpu.memory_space<vmem>>, %arg2: memref<784x128xbf16, #tpu.memory_space<vmem>>, %arg3: memref<1x128xf32, #tpu.memory_space<vmem>>, %arg4: memref<128x128xbf16, #tpu.memory_space<vmem>>, %arg5: memref<1x128xf32, #tpu.memory_space<vmem>>, %arg6: memref<128x128xbf16, #tpu.memory_space<vmem>>, %arg7: memref<1x128xf32, #tpu.memory_space<vmem>>, %arg8: memref<128x128xbf16, #tpu.memory_space<vmem>>) attributes {dimension_semantics = [#tpu.dimension_semantics<parallel>], iteration_bounds = array<i64: 4>, scalar_prefetch = 0 : i64, scratch_operands = 0 : i64, tpu.core_type = #tpu.core_type<tc>, window_params = [{transform_indices = @transform_0, window_bounds = array<i64: 128, 784>}, {pipeline_mode = #tpu.pipeline_mode<synchronous>, transform_indices = @transform_1, window_bounds = array<i64: 784, 128>}, {pipeline_mode = #tpu.pipeline_mode<synchronous>, transform_indices = @transform_2, window_bounds = array<i64: 1, 128>}, {pipeline_mode = #tpu.pipeline_mode<synchronous>, transform_indices = @transform_3, window_bounds = array<i64: 128, 128>}, {pipeline_mode = #tpu.pipeline_mode<synchronous>, transform_indices = @transform_4, window_bounds = array<i64: 1, 128>}, {pipeline_mode = #tpu.pipeline_mode<synchronous>, transform_indices = @transform_5, window_bounds = array<i64: 128, 128>}, {pipeline_mode = #tpu.pipeline_mode<synchronous>, transform_indices = @transform_6, window_bounds = array<i64: 1, 128>}, {transform_indices = @transform_7, window_bounds = array<i64: 128, 128>}]} {
    %c0 = arith.constant 0 : index
    %c0_0 = arith.constant 0 : index
    %0 = vector.load %arg1[%c0, %c0_0] : memref<128x784xf32, #tpu.memory_space<vmem>>, vector<128x784xf32>
    %1 = arith.truncf %0 : vector<128x784xf32> to vector<128x784xbf16>
    %c0_1 = arith.constant 0 : index
    %c0_2 = arith.constant 0 : index
    %2 = vector.load %arg2[%c0_1, %c0_2] : memref<784x128xbf16, #tpu.memory_space<vmem>>, vector<784x128xbf16>
    %cst = arith.constant dense<0.000000e+00> : vector<128x128xf32>
    %3 = tpu.matmul %1, %2, %cst {dimension_numbers = #tpu.dot_dimension_numbers<[1], [0], [0], [1], [0, 0, 1, 1], [], []>} : vector<128x784xbf16>, vector<784x128xbf16>, vector<128x128xf32> -> vector<128x128xf32>
    %c0_3 = arith.constant 0 : index
    %c0_4 = arith.constant 0 : index
    %4 = vector.load %arg3[%c0_3, %c0_4] : memref<1x128xf32, #tpu.memory_space<vmem>>, vector<1x128xf32>
    %5 = vector.broadcast %4 : vector<1x128xf32> to vector<128x128xf32>
    %6 = arith.addf %3, %5 : vector<128x128xf32>
    %cst_5 = arith.constant 0.000000e+00 : f32
    %7 = vector.broadcast %cst_5 : f32 to vector<128x128xf32>
    %8 = arith.maximumf %6, %7 : vector<128x128xf32>
    %9 = arith.truncf %8 : vector<128x128xf32> to vector<128x128xbf16>
    %c0_6 = arith.constant 0 : index
    %c0_7 = arith.constant 0 : index
    %10 = vector.load %arg4[%c0_6, %c0_7] : memref<128x128xbf16, #tpu.memory_space<vmem>>, vector<128x128xbf16>
    %cst_8 = arith.constant dense<0.000000e+00> : vector<128x128xf32>
    %11 = tpu.matmul %9, %10, %cst_8 {dimension_numbers = #tpu.dot_dimension_numbers<[1], [0], [0], [1], [0, 0, 1, 1], [], []>} : vector<128x128xbf16>, vector<128x128xbf16>, vector<128x128xf32> -> vector<128x128xf32>
    %c0_9 = arith.constant 0 : index
    %c0_10 = arith.constant 0 : index
    %12 = vector.load %arg5[%c0_9, %c0_10] : memref<1x128xf32, #tpu.memory_space<vmem>>, vector<1x128xf32>
    %13 = vector.broadcast %12 : vector<1x128xf32> to vector<128x128xf32>
    %14 = arith.addf %11, %13 : vector<128x128xf32>
    %cst_11 = arith.constant 0.000000e+00 : f32
    %15 = vector.broadcast %cst_11 : f32 to vector<128x128xf32>
    %16 = arith.maximumf %14, %15 : vector<128x128xf32>
    %17 = arith.truncf %16 : vector<128x128xf32> to vector<128x128xbf16>
    %c0_12 = arith.constant 0 : index
    %c0_13 = arith.constant 0 : index
    %18 = vector.load %arg6[%c0_12, %c0_13] : memref<128x128xbf16, #tpu.memory_space<vmem>>, vector<128x128xbf16>
    %cst_14 = arith.constant dense<0.000000e+00> : vector<128x128xf32>
    %19 = tpu.matmul %17, %18, %cst_14 {dimension_numbers = #tpu.dot_dimension_numbers<[1], [0], [0], [1], [0, 0, 1, 1], [], []>} : vector<128x128xbf16>, vector<128x128xbf16>, vector<128x128xf32> -> vector<128x128xf32>
    %c0_15 = arith.constant 0 : index
    %c0_16 = arith.constant 0 : index
    %20 = vector.load %arg7[%c0_15, %c0_16] : memref<1x128xf32, #tpu.memory_space<vmem>>, vector<1x128xf32>
    %21 = vector.broadcast %20 : vector<1x128xf32> to vector<128x128xf32>
    %22 = arith.addf %19, %21 : vector<128x128xf32>
    %cst_17 = arith.constant 0.000000e+00 : f32
    %23 = vector.broadcast %cst_17 : f32 to vector<128x128xf32>
    %24 = arith.maximumf %22, %23 : vector<128x128xf32>
    %25 = arith.truncf %24 : vector<128x128xf32> to vector<128x128xbf16>
    %c0_18 = arith.constant 0 : index
    %c0_19 = arith.constant 0 : index
    %26 = vector.load %arg8[%c0_18, %c0_19] : memref<128x128xbf16, #tpu.memory_space<vmem>>, vector<128x128xbf16>
    tpu.vector_store %arg8[%c0_18, %c0_19], %25 {strides = array<i32>} : memref<128x128xbf16, #tpu.memory_space<vmem>>, vector<128x128xbf16>,
    return
  }
  func.func @transform_0(%arg0: i32) -> (i32, i32) {
    %c0_i32 = arith.constant 0 : i32
    %c0_i32_0 = arith.constant 0 : i32
    return %arg0, %c0_i32 : i32, i32
  }
  func.func @transform_1(%arg0: i32) -> (i32, i32) {
    %c0_i32 = arith.constant 0 : i32
    %c0_i32_0 = arith.constant 0 : i32
    %c0_i32_1 = arith.constant 0 : i32
    return %c0_i32, %c0_i32_0 : i32, i32
  }
  func.func @transform_2(%arg0: i32) -> (i32, i32) {
    %c0_i32 = arith.constant 0 : i32
    %c0_i32_0 = arith.constant 0 : i32
    %c0_i32_1 = arith.constant 0 : i32
    return %c0_i32, %c0_i32_0 : i32, i32
  }
  func.func @transform_3(%arg0: i32) -> (i32, i32) {
    %c0_i32 = arith.constant 0 : i32
    %c0_i32_0 = arith.constant 0 : i32
    %c0_i32_1 = arith.constant 0 : i32
    return %c0_i32, %c0_i32_0 : i32, i32
  }
  func.func @transform_4(%arg0: i32) -> (i32, i32) {
    %c0_i32 = arith.constant 0 : i32
    %c0_i32_0 = arith.constant 0 : i32
    %c0_i32_1 = arith.constant 0 : i32
    return %c0_i32, %c0_i32_0 : i32, i32
  }
  func.func @transform_5(%arg0: i32) -> (i32, i32) {
    %c0_i32 = arith.constant 0 : i32
    %c0_i32_0 = arith.constant 0 : i32
    %c0_i32_1 = arith.constant 0 : i32
    return %c0_i32, %c0_i32_0 : i32, i32
  }
  func.func @transform_6(%arg0: i32) -> (i32, i32) {
    %c0_i32 = arith.constant 0 : i32
    %c0_i32_0 = arith.constant 0 : i32
    %c0_i32_1 = arith.constant 0 : i32
    return %c0_i32, %c0_i32_0 : i32, i32
  }
  func.func @transform_7(%arg0: i32) -> (i32, i32) {
    %c0_i32 = arith.constant 0 : i32
    %c0_i32_0 = arith.constant 0 : i32
    return %arg0, %c0_i32 : i32, i32
  }
}

</mosaic_0001>

<bundles_post_ra>
// kernel: mlp_forward.1
= control target key start
LH: loop header
LB: loop body
LE: loop exit
PB: predicated region body
PF: predicated region fallthrough
CT: control target
= control target key end

     0   :  { %s2421_s24 = smov 0   ;;  %s2936_s0 = inlined_call_operand.vmem [shape: f32[512,784], index: 0, kind: input, shape index: {}]   ;;  %s2937_s1 = inlined_call_operand.vmem [shape: bf16[784,128], index: 1, kind: input, shape index: {}]   ;;  %s2938_s2 = inlined_call_operand.vmem [shape: f32[1,128], index: 2, kind: input, shape index: {}]   ;;  %s2939_s3 = inlined_call_operand.vmem [shape: bf16[128,128], index: 3, kind: input, shape index: {}]   ;;  %s2940_s4 = inlined_call_operand.vmem [shape: f32[1,128], index: 4, kind: input, shape index: {}]   ;;  %s2941_s5 = inlined_call_operand.vmem [shape: bf16[128,128], index: 5, kind: input, shape index: {}]   ;;  %s2942_s6 = inlined_call_operand.vmem [shape: f32[1,128], index: 6, kind: input, shape index: {}]   ;;  %s2943_s7 = inlined_call_operand.vmem [shape: bf16[512,128], index: 7, kind: output, shape index: {}]  }
   0x1 LB: > { %s1802_s25 = sadd.s32 4294967295, %s2379_s24   ;;  %p1806_p0 = scmp.ge.s32.totalorder %s2379_s24, 1  ;;  %s2379_s24 = sphi %s2421_s24, %s17_s24  }
   0x2   : > { %p239_p1 = scmp.lt.s32.totalorder %s2379_s24, 5 }
   0x4   : > { %p240_p2 = pnand %p1806_p0, %p239_p1 }
   0x6   : > { %243 = sbr.rel (%p240_p2) target bundleno = 778 (0x30a), region = 48 }
   0xb   : > { %v2308_v0 = vld [vmem:[%s2937_s1 + $0x78] sm:$0xff]   ;;  %v2312_v4 = vld [vmem:[%s2937_s1 + $0x70] sm:$0xff]   ;;  %v2316_v8 = vld [vmem:[%s2937_s1 + $0x68] sm:$0xff]   ;;  %s1807_s12 = sshll.u32 %s1802_s25, 4  ;;  %vm853_vm0 = vcmask 130048  }
   0xc   : > { %v2309_v1 = vld [vmem:[%s2937_s1 + $0xf8] sm:$0xff]   ;;  %1968 = vmatprep.subr.bf16.mxu0 %v2308_v0  ;;  %v2313_v5 = vld [vmem:[%s2937_s1 + $0xf0] sm:$0xff]   ;;  %v2317_v9 = vld [vmem:[%s2937_s1 + $0xe8] sm:$0xff]   ;;  %p273_p3 = scmp.lt.s32.totalorder %s1807_s12, 63 }
   0xd   : > { %v2310_v2 = vld [vmem:[%s2937_s1 + $0x38] sm:$0xff]   ;;  %2032 = vmatprep.subr.bf16.mxu1 %v2309_v1  ;;  %v2314_v6 = vld [vmem:[%s2937_s1 + $0x30] sm:$0xff]   ;;  %v2318_v10 = vld [vmem:[%s2937_s1 + $0x28] sm:$0xff]  }
   0xe   : > { %v2311_v3 = vld [vmem:[%s2937_s1 + $0xb8] sm:$0xff]   ;;  %1969 = vmatpush3.bf16.msra.mxu0 %v2310_v2  ;;  %v2315_v7 = vld [vmem:[%s2937_s1 + $0xb0] sm:$0xff]   ;;  %v2319_v11 = vld [vmem:[%s2937_s1 + $0xa8] sm:$0xff]   ;;  %s2955_s12 = smov (!%p273_p3, %s1807_s12), 63 }
   0xf   : > { %2033 = vmatpush3.bf16.msra.mxu1 %v2311_v3  ;;  %1970 = vmatprep.subr.bf16.mxu0 %v2312_v4  ;;  %v2320_v12 = vld [vmem:[%s2937_s1 + $0x60] sm:$0xff]   ;;  %v2324_v16 = vld [vmem:[%s2937_s1 + $0x58] sm:$0xff]   ;;  %v2328_v20 = vld [vmem:[%s2937_s1 + $0x50] sm:$0xff]   ;;  %s2299_s14 = smul.u32 56, %s2955_s12  ;;  %s1810_s19 = sshll.u32 %s2955_s12, 2 }
  0x10   : > { %2034 = vmatprep.subr.bf16.mxu1 %v2313_v5  ;;  %v2321_v13 = vld [vmem:[%s2937_s1 + $0xe0] sm:$0xff]   ;;  %v2325_v17 = vld [vmem:[%s2937_s1 + $0xd8] sm:$0xff]   ;;  %v2329_v21 = vld [vmem:[%s2937_s1 + $0xd0] sm:$0xff]   ;;  %s2923_s21 = scalar_lea.vmem %s2943_s7, %s1810_s19 }
  0x11   : > { %v2322_v14 = vld [vmem:[%s2937_s1 + $0x20] sm:$0xff]   ;;  %v2326_v18 = vld [vmem:[%s2937_s1 + $0x18] sm:$0xff]   ;;  %v2330_v22 = vld [vmem:[%s2937_s1 + $0x10] sm:$0xff]   ;;  %s2527_s26 = scalar_lea.vmem %s2936_s0, %s2299_s14 }
  0x12   : > { %1971 = vmatpush3.bf16.msra.mxu0 %v2314_v6  ;;  %v2323_v15 = vld [vmem:[%s2937_s1 + $0xa0] sm:$0xff]   ;;  %v2327_v19 = vld [vmem:[%s2937_s1 + $0x98] sm:$0xff]   ;;  %v2331_v23 = vld [vmem:[%s2937_s1 + $0x90] sm:$0xff]  }
  0x13   : > { %2035 = vmatpush3.bf16.msra.mxu1 %v2315_v7  ;;  %1972 = vmatprep.subr.bf16.mxu0 %v2316_v8  ;;  %v2332_v24 = vld [vmem:[%s2937_s1 + $0x48] sm:$0xff]   ;;  %v2336_v28 = vld [vmem:[%s2937_s1 + $0x40] sm:$0xff]   ;;  %v289_v34 = vld [vmem:[%s2527_s26 + $0x18] sm:$0xff] }
  0x14   : > { %2036 = vmatprep.subr.bf16.mxu1 %v2317_v9  ;;  %v2333_v25 = vld [vmem:[%s2937_s1 + $0xc8] sm:$0xff]   ;;  %v2337_v29 = vld [vmem:[%s2937_s1 + $0xc0] sm:$0xff]   ;;  %v296_v36 = vld [vmem:[%s2527_s26 + $0x50] sm:$0xff] }
  0x15   : > { %v2334_v26 = vld [vmem:[%s2937_s1 + $0x8] sm:$0xff]   ;;  %v2338_v30 = vld [vmem:[%s2937_s1] sm:$0xff]   ;;  %v293_v38 = vld [vmem:[%s2527_s26 + $0x38] sm:$0xff]  ;;  %v401_v39 = vpack.c.bf16 %v296_v36, %v289_v34 }
  0x16   : > { %1973 = vmatpush3.bf16.msra.mxu0 %v2318_v10  ;;  %v2335_v27 = vld [vmem:[%s2937_s1 + $0x88] sm:$0xff]   ;;  %v2339_v31 = vld [vmem:[%s2937_s1 + $0x80] sm:$0xff]   ;;  %v288_v41 = vld [vmem:[%s2527_s26 + $0x10] sm:$0xff] }
  0x17   : > { %2037 = vmatpush3.bf16.msra.mxu1 %v2319_v11  ;;  %1974 = vmatprep.subr.bf16.mxu0 %v2320_v12  ;;  %v287_v32 = vld [vmem:[%s2527_s26 + $0x8] sm:$0xff]  ;;  %v294_v33 = vld [vmem:[%s2527_s26 + $0x40] sm:$0xff]  ;;  %v2340_v44 = vld [vmem:[%s2937_s1 + $0x178] sm:$0xff]  }
  0x18   : > { %2038 = vmatprep.subr.bf16.mxu1 %v2321_v13  ;;  %v399_v35 = vpack.c.bf16 %v294_v33, %v287_v32  ;;  %v286_v37 = vld [vmem:[%s2527_s26] sm:$0xff]  ;;  %v295_v42 = vld [vmem:[%s2527_s26 + $0x48] sm:$0xff]  ;;  %1007 = vmatprep.mubr.bf16.mxu1 %v401_v39  ;;  %v2341_v45 = vld [vmem:[%s2937_s1 + $0x138] sm:$0xff]  }
  0x19   : > { %v398_v40 = vpack.c.bf16 %v293_v38, %v286_v37  ;;  %v400_v43 = vpack.c.bf16 %v295_v42, %v288_v41  ;;  %v301_v46 = vld [vmem:[%s2527_s26 + $0x78] sm:$0xff]  ;;  %v308_v47 = vld [vmem:[%s2527_s26 + $0xb0] sm:$0xff]  ;;  %v303_v48 = vld [vmem:[%s2527_s26 + $0x88] sm:$0xff] }
  0x1a   : > { %1975 = vmatpush3.bf16.msra.mxu0 %v2322_v14  ;;  %910 = vmatprep.mubr.bf16.mxu0 %v399_v35  ;;  %v310_v49 = vld [vmem:[%s2527_s26 + $0xc0] sm:$0xff]  ;;  %v406_v50 = vpack.c.bf16 %v308_v47, %v301_v46  ;;  %v300_v52 = vld [vmem:[%s2527_s26 + $0x70] sm:$0xff]  ;;  %v307_v53 = vld [vmem:[%s2527_s26 + $0xa8] sm:$0xff] }
  0x1b   : > { %2039 = vmatpush3.bf16.msra.mxu1 %v2323_v15  ;;  %1976 = vmatprep.subr.bf16.mxu0 %v2324_v16  ;;  %v408_v51 = vpack.c.bf16 %v310_v49, %v303_v48  ;;  %v302_v54 = vld [vmem:[%s2527_s26 + $0x80] sm:$0xff]  ;;  %v309_v55 = vld [vmem:[%s2527_s26 + $0xb8] sm:$0xff]  ;;  %v405_v56 = vpack.c.bf16 %v307_v53, %v300_v52  ;;  %v2342_v57 = vld [vmem:[%s2937_s1 + $0x170] sm:$0xff]  }
  0x1c   : > { %2040 = vmatprep.subr.bf16.mxu1 %v2325_v17  ;;  %v407_v58 = vpack.c.bf16 %v309_v55, %v302_v54  ;;  %v2343_v59 = vld [vmem:[%s2937_s1 + $0x130] sm:$0xff]   ;;  %v315_v60 = vld [vmem:[%s2527_s26 + $0xe8] sm:$0xff]  ;;  %v322_v61 = vld [vmem:[%s2527_s26 + $0x120] sm:$0xff] }
  0x1d   : > { %v413_v62 = vpack.c.bf16 %v322_v61, %v315_v60  ;;  %v317_v63 = vld [vmem:[%s2527_s26 + $0xf8] sm:$0xff]  ;;  %v324_v0 = vld [vmem:[%s2527_s26 + $0x130] sm:$0xff]  ;;  %v314_v2 = vld [vmem:[%s2527_s26 + $0xe0] sm:$0xff] }
  0x1e   : > { %1977 = vmatpush3.bf16.msra.mxu0 %v2326_v18  ;;  %v415_v1 = vpack.c.bf16 %v324_v0, %v317_v63  ;;  %v321_v3 = vld [vmem:[%s2527_s26 + $0x118] sm:$0xff]  ;;  %v316_v4 = vld [vmem:[%s2527_s26 + $0xf0] sm:$0xff]  ;;  %v2344_v5 = vld [vmem:[%s2937_s1 + $0x168] sm:$0xff]  }
  0x1f   : > { %2041 = vmatpush3.bf16.msra.mxu1 %v2327_v19  ;;  %1978 = vmatprep.subr.bf16.mxu0 %v2328_v20  ;;  %v2345_v6 = vld [vmem:[%s2937_s1 + $0x128] sm:$0xff]   ;;  %v329_v8 = vld [vmem:[%s2527_s26 + $0x158] sm:$0xff]  ;;  %v336_v9 = vld [vmem:[%s2527_s26 + $0x190] sm:$0xff]  ;;  %v412_v12 = vpack.c.bf16 %v321_v3, %v314_v2 }
  0x20   : > { %2042 = vmatprep.subr.bf16.mxu1 %v2329_v21  ;;  %v323_v7 = vld [vmem:[%s2527_s26 + $0x128] sm:$0xff]  ;;  %v338_v11 = vld [vmem:[%s2527_s26 + $0x1a0] sm:$0xff]  ;;  %v420_v14 = vpack.c.bf16 %v336_v9, %v329_v8  ;;  %v328_v18 = vld [vmem:[%s2527_s26 + $0x150] sm:$0xff] }
  0x21   : > { %v331_v10 = vld [vmem:[%s2527_s26 + $0x168] sm:$0xff]  ;;  %v414_v13 = vpack.c.bf16 %v323_v7, %v316_v4  ;;  %v2346_v15 = vld [vmem:[%s2937_s1 + $0x160] sm:$0xff]   ;;  %v337_v21 = vld [vmem:[%s2527_s26 + $0x198] sm:$0xff] }
  0x22   : > { %1979 = vmatpush3.bf16.msra.mxu0 %v2330_v22  ;;  %v422_v16 = vpack.c.bf16 %v338_v11, %v331_v10  ;;  %v2347_v17 = vld [vmem:[%s2937_s1 + $0x120] sm:$0xff]   ;;  %v335_v19 = vld [vmem:[%s2527_s26 + $0x188] sm:$0xff]  ;;  %v2350_v32 = vld [vmem:[%s2937_s1 + $0x150] sm:$0xff]  }
  0x23   : > { %2043 = vmatpush3.bf16.msra.mxu1 %v2331_v23  ;;  %1980 = vmatprep.subr.bf16.mxu0 %v2332_v24  ;;  %v330_v20 = vld [vmem:[%s2527_s26 + $0x160] sm:$0xff]  ;;  %v343_v22 = vld [vmem:[%s2527_s26 + $0x1c8] sm:$0xff]  ;;  %v2348_v24 = vld [vmem:[%s2937_s1 + $0x158] sm:$0xff]  }
  0x24   : > { %2044 = vmatprep.subr.bf16.mxu1 %v2333_v25  ;;  %v350_v23 = vld [vmem:[%s2527_s26 + $0x200] sm:$0xff]  ;;  %v345_v25 = vld [vmem:[%s2527_s26 + $0x1d8] sm:$0xff]  ;;  %v2351_v33 = vld [vmem:[%s2937_s1 + $0x110] sm:$0xff]  }
  0x25   : > { %v342_v34 = vld [vmem:[%s2527_s26 + $0x1c0] sm:$0xff]  ;;  %v349_v35 = vld [vmem:[%s2527_s26 + $0x1f8] sm:$0xff]  ;;  %v344_v36 = vld [vmem:[%s2527_s26 + $0x1d0] sm:$0xff] }
  0x26   : > { %1981 = vmatpush3.bf16.msra.mxu0 %v2334_v26  ;;  %v352_v26 = vld [vmem:[%s2527_s26 + $0x210] sm:$0xff]  ;;  %v351_v37 = vld [vmem:[%s2527_s26 + $0x208] sm:$0xff]  ;;  %v357_v38 = vld [vmem:[%s2527_s26 + $0x238] sm:$0xff] }
  0x27   : > { %2045 = vmatpush3.bf16.msra.mxu1 %v2335_v27  ;;  %1982 = vmatprep.subr.bf16.mxu0 %v2336_v28  ;;  %v2349_v27 = vld [vmem:[%s2937_s1 + $0x118] sm:$0xff]   ;;  %v419_v28 = vpack.c.bf16 %v335_v19, %v328_v18  ;;  %v364_v39 = vld [vmem:[%s2527_s26 + $0x270] sm:$0xff]  ;;  %v366_v41 = vld [vmem:[%s2527_s26 + $0x280] sm:$0xff] }
  0x28   : > { %2046 = vmatprep.subr.bf16.mxu1 %v2337_v29  ;;  %v421_v29 = vpack.c.bf16 %v337_v21, %v330_v20  ;;  %v2352_v42 = vld [vmem:[%s2937_s1 + $0x148] sm:$0xff]   ;;  %v434_v46 = vpack.c.bf16 %v364_v39, %v357_v38  ;;  %v356_v48 = vld [vmem:[%s2527_s26 + $0x230] sm:$0xff]  ;;  %v2354_v49 = vld [vmem:[%s2937_s1 + $0x140] sm:$0xff]  }
  0x29   : > { %v2355_v52 = vld [vmem:[%s2937_s1 + $0x100] sm:$0xff]   ;;  %v365_v53 = vld [vmem:[%s2527_s26 + $0x278] sm:$0xff]  ;;  %v371_v54 = vld [vmem:[%s2527_s26 + $0x2a8] sm:$0xff] }
  0x2a   : > { %1983 = vmatpush3.bf16.msra.mxu0 %v2338_v30  ;;  %v427_v30 = vpack.c.bf16 %v350_v23, %v343_v22  ;;  %v378_v55 = vld [vmem:[%s2527_s26 + $0x2e0] sm:$0xff]  ;;  %v377_v0 = vld [vmem:[%s2527_s26 + $0x2d8] sm:$0xff]  ;;  %v379_v2 = vld [vmem:[%s2527_s26 + $0x2e8] sm:$0xff] }
  0x2b   : > { %2047 = vmatpush3.bf16.msra.mxu1 %v2339_v31  ;;  %2096 = vmatprep.subr.bf16.mxu0 %v2340_v44  ;;  %v429_v31 = vpack.c.bf16 %v352_v26, %v345_v25  ;;  %v441_v60 = vpack.c.bf16 %v378_v55, %v371_v54  ;;  %v370_v63 = vld [vmem:[%s2527_s26 + $0x2a0] sm:$0xff]  ;;  %v385_v3 = vld [vmem:[%s2527_s26 + $0x318] sm:$0xff]  ;;  %v392_v4 = vld [vmem:[%s2527_s26 + $0x350] sm:$0xff] }
  0x2c   : > { %2283 = vmatprep.subr.bf16.mxu1 %v2340_v44  ;;  %v2353_v44 = vld [vmem:[%s2937_s1 + $0x108] sm:$0xff]   ;;  %v440_v7 = vpack.c.bf16 %v377_v0, %v370_v63  ;;  %v448_v9 = vpack.c.bf16 %v392_v4, %v385_v3  ;;  %v384_v11 = vld [vmem:[%s2527_s26 + $0x310] sm:$0xff]  ;;  %v382_v18 = vld [vmem:[%s2527_s26 + $0x300] sm:$0xff] }
  0x2d   : > { %911 = vmatmul.mubr.bf16.vlgmr.msra.gmra.mxu0 %v398_v40  ;;  %v359_v40 = vld [vmem:[%s2527_s26 + $0x248] sm:$0xff]  ;;  %v290_v23 = vld [vmem:[%s2527_s26 + $0x20] sm:$0xff]  ;;  %v381_v26 = vld [vmem:[%s2527_s26 + $0x2f8] sm:$0xff] }
  0x2e   : > { %1008 = vmatmul.mubr.bf16.vlgmr.msra.gmra.mxu1 %v400_v43  ;;  %2097 = vmatpush3.bf16.msra.mxu0 %v2341_v45  ;;  %v426_v43 = vpack.c.bf16 %v349_v35, %v342_v34  ;;  %v436_v47 = vpack.c.bf16 %v366_v41, %v359_v40  ;;  %v374_v25 = vld [vmem:[%s2527_s26 + $0x2c0] sm:$0xff]  ;;  %v304_v35 = vld [vmem:[%s2527_s26 + $0x90] sm:$0xff]  ;;  %v395_v38 = vld [vmem:[%s2527_s26 + $0x368] sm:$0xff] }
  0x2f   : > { %2291 = vmatpush3.bf16.msra.mxu1 %v2341_v45  ;;  %918 = vmatprep.mubr.bf16.mxu0 %v406_v50  ;;  %v428_v45 = vpack.c.bf16 %v351_v37, %v344_v36  ;;  %v363_v50 = vld [vmem:[%s2527_s26 + $0x268] sm:$0xff]  ;;  %v388_v37 = vld [vmem:[%s2527_s26 + $0x330] sm:$0xff]  ;;  %v326_v40 = vld [vmem:[%s2527_s26 + $0x140] sm:$0xff] }
  0x30   : > { %1015 = vmatprep.mubr.bf16.mxu1 %v408_v51  ;;  %2098 = vmatprep.subr.bf16.mxu0 %v2342_v57  ;;  %v358_v51 = vld [vmem:[%s2527_s26 + $0x240] sm:$0xff]  ;;  %v311_v36 = vld [vmem:[%s2527_s26 + $0xc8] sm:$0xff]  ;;  %v292_v41 = vld [vmem:[%s2527_s26 + $0x30] sm:$0xff] }
  0x31   : > { %2284 = vmatprep.subr.bf16.mxu1 %v2342_v57  ;;  %v380_v57 = vld [vmem:[%s2527_s26 + $0x2f0] sm:$0xff]  ;;  %v319_v39 = vld [vmem:[%s2527_s26 + $0x108] sm:$0xff]  ;;  %v354_v0 = vld [vmem:[%s2527_s26 + $0x220] sm:$0xff] }
  0x32   : > { %2099 = vmatpush3.bf16.msra.mxu0 %v2343_v59  ;;  %v327_v54 = vld [vmem:[%s2527_s26 + $0x148] sm:$0xff] }
  0x33   : > { %2292 = vmatpush3.bf16.msra.mxu1 %v2343_v59  ;;  %2100 = vmatprep.subr.bf16.mxu0 %v2344_v5  ;;  %v435_v59 = vpack.c.bf16 %v365_v53, %v358_v51  ;;  %v333_v51 = vld [vmem:[%s2527_s26 + $0x178] sm:$0xff]  ;;  %v320_v53 = vld [vmem:[%s2527_s26 + $0x110] sm:$0xff]  ;;  %v347_v63 = vld [vmem:[%s2527_s26 + $0x1e8] sm:$0xff] }
  0x34   : > { %2285 = vmatprep.subr.bf16.mxu1 %v2344_v5  ;;  %v387_v5 = vld [vmem:[%s2527_s26 + $0x328] sm:$0xff] }
  0x35   : > { %919 = vmatmul.mubr.bf16.gmra.mxu0 %v405_v56  ;;  %v373_v56 = vld [vmem:[%s2527_s26 + $0x2b8] sm:$0xff] }
  0x36   : > { %1016 = vmatmul.mubr.bf16.gmra.mxu1 %v407_v58  ;;  %926 = vmatprep.mubr.bf16.mxu0 %v413_v62  ;;  %v433_v58 = vpack.c.bf16 %v363_v50, %v356_v48  ;;  %v443_v61 = vpack.c.bf16 %v380_v57, %v373_v56  ;;  %v2356_v62 = vld [vmem:[%s2937_s1 + $0x180] sm:$0xff]   ;;  %v325_v48 = vld [vmem:[%s2527_s26 + $0x138] sm:$0xff] }
  0x37   : > { %1023 = vmatprep.mubr.bf16.mxu1 %v415_v1  ;;  %2101 = vmatpush3.bf16.msra.mxu0 %v2345_v6  ;;  %v372_v1 = vld [vmem:[%s2527_s26 + $0x2b0] sm:$0xff]  ;;  %v313_v50 = vld [vmem:[%s2527_s26 + $0xd8] sm:$0xff] }
  0x38   : > { %2293 = vmatpush3.bf16.msra.mxu1 %v2345_v6  ;;  %2102 = vmatprep.subr.bf16.mxu0 %v2346_v15  ;;  %v394_v6 = vld [vmem:[%s2527_s26 + $0x360] sm:$0xff]  ;;  %v442_v8 = vpack.c.bf16 %v379_v2, %v372_v1  ;;  %v348_v1 = vld [vmem:[%s2527_s26 + $0x1f0] sm:$0xff]  ;;  %v355_v2 = vld [vmem:[%s2527_s26 + $0x228] sm:$0xff] }
  0x39   : > { %2286 = vmatprep.subr.bf16.mxu1 %v2346_v15  ;;  %v450_v10 = vpack.c.bf16 %v394_v6, %v387_v5  ;;  %v291_v15 = vld [vmem:[%s2527_s26 + $0x28] sm:$0xff]  ;;  %v431_v5 = vpack.c.bf16 %v354_v0, %v347_v63  ;;  %v432_v6 = vpack.c.bf16 %v355_v2, %v348_v1  ;;  %v2369_v63 = vld [vmem:[%s2941_s5 + $0x18] sm:$0xff]  }
  0x3b   : > { %2103 = vmatpush3.bf16.msra.mxu0 %v2347_v17 }
  0x3c   : > { %2294 = vmatpush3.bf16.msra.mxu1 %v2347_v17  ;;  %2104 = vmatprep.subr.bf16.mxu0 %v2348_v24  ;;  %v375_v17 = vld [vmem:[%s2527_s26 + $0x2c8] sm:$0xff] }
  0x3d   : > { %927 = vmatmul.mubr.bf16.gmra.mxu0 %v412_v12  ;;  %2287 = vmatprep.subr.bf16.mxu1 %v2348_v24  ;;  %v391_v12 = vld [vmem:[%s2527_s26 + $0x348] sm:$0xff]  ;;  %v445_v22 = vpack.c.bf16 %v382_v18, %v375_v17  ;;  %v297_v24 = vld [vmem:[%s2527_s26 + $0x58] sm:$0xff] }
  0x3e   : > { %1024 = vmatmul.mubr.bf16.gmra.mxu1 %v414_v13  ;;  %934 = vmatprep.mubr.bf16.mxu0 %v420_v14  ;;  %v386_v13 = vld [vmem:[%s2527_s26 + $0x320] sm:$0xff]  ;;  %v393_v14 = vld [vmem:[%s2527_s26 + $0x358] sm:$0xff]  ;;  %v447_v19 = vpack.c.bf16 %v391_v12, %v384_v11  ;;  %v368_v12 = vld [vmem:[%s2527_s26 + $0x290] sm:$0xff] }
  0x3f   : > { %1031 = vmatprep.mubr.bf16.mxu1 %v422_v16  ;;  %2105 = vmatpush3.bf16.msra.mxu0 %v2349_v27  ;;  %v298_v16 = vld [vmem:[%s2527_s26 + $0x60] sm:$0xff]  ;;  %v449_v20 = vpack.c.bf16 %v393_v14, %v386_v13  ;;  %v361_v11 = vld [vmem:[%s2527_s26 + $0x258] sm:$0xff]  ;;  %v376_v13 = vld [vmem:[%s2527_s26 + $0x2d0] sm:$0xff] }
  0x40   : > { %2295 = vmatpush3.bf16.msra.mxu1 %v2349_v27  ;;  %2106 = vmatprep.subr.bf16.mxu0 %v2350_v32  ;;  %v403_v21 = vpack.c.bf16 %v298_v16, %v291_v15  ;;  %v305_v27 = vld [vmem:[%s2527_s26 + $0x98] sm:$0xff]  ;;  %v383_v14 = vld [vmem:[%s2527_s26 + $0x308] sm:$0xff]  ;;  %v438_v17 = vpack.c.bf16 %v368_v12, %v361_v11 }
  0x41   : > { %2288 = vmatprep.subr.bf16.mxu1 %v2350_v32  ;;  %v444_v32 = vpack.c.bf16 %v381_v26, %v374_v25  ;;  %v446_v18 = vpack.c.bf16 %v383_v14, %v376_v13  ;;  %v2357_v25 = vld [vmem:[%s2939_s3 + $0x38] sm:$0xff]   ;;  %v2358_v26 = vld [vmem:[%s2939_s3 + $0x30] sm:$0xff]  }
  0x43   : > { %2107 = vmatpush3.bf16.msra.mxu0 %v2351_v33 }
  0x44   : > { %2296 = vmatpush3.bf16.msra.mxu1 %v2351_v33  ;;  %2108 = vmatprep.subr.bf16.mxu0 %v2352_v42 }
  0x45   : > { %935 = vmatmul.mubr.bf16.gmra.mxu0 %v419_v28  ;;  %2289 = vmatprep.subr.bf16.mxu1 %v2352_v42  ;;  %v312_v28 = vld [vmem:[%s2527_s26 + $0xd0] sm:$0xff]  ;;  %v299_v42 = vld [vmem:[%s2527_s26 + $0x68] sm:$0xff] }
  0x46   : > { %1032 = vmatmul.mubr.bf16.gmra.mxu1 %v421_v29  ;;  %942 = vmatprep.mubr.bf16.mxu0 %v427_v30  ;;  %v389_v29 = vld [vmem:[%s2527_s26 + $0x338] sm:$0xff]  ;;  %v396_v30 = vld [vmem:[%s2527_s26 + $0x370] sm:$0xff]  ;;  %v410_v33 = vpack.c.bf16 %v312_v28, %v305_v27  ;;  %v2359_v27 = vld [vmem:[%s2939_s3 + $0x28] sm:$0xff]  }
  0x47   : > { %1039 = vmatprep.mubr.bf16.mxu1 %v429_v31  ;;  %2109 = vmatpush3.bf16.msra.mxu0 %v2353_v44  ;;  %v402_v31 = vpack.c.bf16 %v297_v24, %v290_v23  ;;  %v452_v34 = vpack.c.bf16 %v396_v30, %v389_v29  ;;  %v2360_v28 = vld [vmem:[%s2939_s3 + $0x20] sm:$0xff]   ;;  %v2361_v29 = vld [vmem:[%s2939_s3 + $0x18] sm:$0xff]   ;;  %v2362_v30 = vld [vmem:[%s2939_s3 + $0x10] sm:$0xff]  }
  0x48   : > { %2297 = vmatpush3.bf16.msra.mxu1 %v2353_v44  ;;  %2110 = vmatprep.subr.bf16.mxu0 %v2354_v49  ;;  %v451_v44 = vpack.c.bf16 %v395_v38, %v388_v37  ;;  %v2739_v37 = vld [vmem:[%s2938_s2] ss:$0 sm:$0xff] }
  0x49   : > { %2290 = vmatprep.subr.bf16.mxu1 %v2354_v49  ;;  %v306_v49 = vld [vmem:[%s2527_s26 + $0xa0] sm:$0xff] }
  0x4a   : > { %v411_v56 = vpack.c.bf16 %v313_v50, %v306_v49 }
  0x4b   : > { %2111 = vmatpush3.bf16.msra.mxu0 %v2355_v52 }
  0x4c   : > { %2298 = vmatpush3.bf16.msra.mxu1 %v2355_v52  ;;  %v340_v52 = vld [vmem:[%s2527_s26 + $0x1b0] sm:$0xff] }
  0x4d   : > { %943 = vmatmul.mubr.bf16.gmra.mxu0 %v426_v43  ;;  %2201 = vmatprep.subr.bf16.mxu1 %v2356_v62  ;;  %v409_v43 = vpack.c.bf16 %v311_v36, %v304_v35  ;;  %v424_v57 = vpack.c.bf16 %v340_v52, %v333_v51  ;;  %v2365_v35 = vld [vmem:[%s2941_s5 + $0x38] sm:$0xff]   ;;  %v2366_v36 = vld [vmem:[%s2941_s5 + $0x30] sm:$0xff]  }
  0x4e   : > { %1040 = vmatmul.mubr.bf16.gmra.mxu1 %v428_v45  ;;  %950 = vmatprep.mubr.bf16.mxu0 %v434_v46  ;;  %v417_v45 = vpack.c.bf16 %v326_v40, %v319_v39  ;;  %v404_v46 = vpack.c.bf16 %v299_v42, %v292_v41 }
  0x4f   : > { %1047 = vmatprep.mubr.bf16.mxu1 %v436_v47  ;;  %v318_v47 = vld [vmem:[%s2527_s26 + $0x100] sm:$0xff]  ;;  %2251 = vmatprep.subr.bf16.mxu0 %v2365_v35 }
  0x50   : > { %v416_v55 = vpack.c.bf16 %v325_v48, %v318_v47 }
  0x55   : > { %951 = vmatmul.mubr.bf16.gmra.mxu0 %v433_v58  ;;  %v418_v58 = vpack.c.bf16 %v327_v54, %v320_v53  ;;  %v2368_v54 = vld [vmem:[%s2941_s5 + $0x20] sm:$0xff]  }
  0x56   : > { %1048 = vmatmul.mubr.bf16.gmra.mxu1 %v435_v59  ;;  %958 = vmatprep.mubr.bf16.mxu0 %v441_v60  ;;  %v332_v59 = vld [vmem:[%s2527_s26 + $0x170] sm:$0xff]  ;;  %v339_v60 = vld [vmem:[%s2527_s26 + $0x1a8] sm:$0xff] }
  0x57   : > { %1055 = vmatprep.mubr.bf16.mxu1 %v443_v61  ;;  %v334_v61 = vld [vmem:[%s2527_s26 + $0x180] sm:$0xff]  ;;  %v423_v3 = vpack.c.bf16 %v339_v60, %v332_v59 }
  0x5d   : > { %959 = vmatmul.mubr.bf16.gmra.mxu0 %v440_v7  ;;  %v346_v7 = vld [vmem:[%s2527_s26 + $0x1e0] sm:$0xff] }
  0x5e   : > { %1056 = vmatmul.mubr.bf16.gmra.mxu1 %v442_v8  ;;  %966 = vmatprep.mubr.bf16.mxu0 %v448_v9  ;;  %v353_v8 = vld [vmem:[%s2527_s26 + $0x218] sm:$0xff]  ;;  %v362_v9 = vld [vmem:[%s2527_s26 + $0x260] sm:$0xff] }
  0x5f   : > { %1063 = vmatprep.mubr.bf16.mxu1 %v450_v10  ;;  %v369_v10 = vld [vmem:[%s2527_s26 + $0x298] sm:$0xff]  ;;  %v430_v15 = vpack.c.bf16 %v353_v8, %v346_v7 }
  0x60   : > { %v439_v16 = vpack.c.bf16 %v369_v10, %v362_v9 }
  0x65   : > { %967 = vmatmul.mubr.bf16.gmra.mxu0 %v447_v19  ;;  %v360_v19 = vld [vmem:[%s2527_s26 + $0x250] sm:$0xff] }
  0x66   : > { %1064 = vmatmul.mubr.bf16.gmra.mxu1 %v449_v20  ;;  %1104 = vmatprep.mubr.bf16.mxu0 %v403_v21  ;;  %v367_v20 = vld [vmem:[%s2527_s26 + $0x288] sm:$0xff]  ;;  %v390_v21 = vld [vmem:[%s2527_s26 + $0x340] sm:$0xff] }
  0x67   : > { %1152 = vmatprep.mubr.bf16.mxu1 %v445_v22  ;;  %v397_v22 = vld [vmem:[%s2527_s26 + $0x378] sm:$0xff]  ;;  %v437_v23 = vpack.c.bf16 %v367_v20, %v360_v19 }
  0x68   : > { %v453_v24 = vpack.c.bf16 %v397_v22, %v390_v21 }
  0x6d   : > { %1105 = vmatmul.mubr.bf16.vlgmr.msra.gmra.mxu0 %v402_v31  ;;  %v2363_v31 = vld [vmem:[%s2939_s3 + $0x8] sm:$0xff]  }
  0x6e   : > { %1153 = vmatmul.mubr.bf16.vlgmr.msra.gmra.mxu1 %v444_v32  ;;  %1112 = vmatprep.mubr.bf16.mxu0 %v410_v33  ;;  %v2364_v32 = vld [vmem:[%s2939_s3] sm:$0xff]  }
  0x6f   : > { %1160 = vmatprep.mubr.bf16.mxu1 %v452_v34  ;;  %2202 = vmatpush3.bf16.msra.mxu1 %v2356_v62  ;;  %v341_v62 = vld [vmem:[%s2527_s26 + $0x1b8] sm:$0xff] }
  0x70   : > { %v425_v4 = vpack.c.bf16 %v341_v62, %v334_v61  ;;  %2219 = vmatprep.subr.bf16.mxu1 %v2357_v25  ;;  %2252 = vmatpush3.bf16.msra.mxu0 %v2365_v35 }
  0x71   : > { %2253 = vmatprep.subr.bf16.mxu0 %v2366_v36 }
  0x74   : > { %2254 = vmatpush3.bf16.msra.mxu0 %v2366_v36 }
  0x75   : > { %1113 = vmatmul.mubr.bf16.gmra.mxu0 %v409_v43 }
  0x76   : > { %1161 = vmatmul.mubr.bf16.gmra.mxu1 %v451_v44  ;;  %1120 = vmatprep.mubr.bf16.mxu0 %v417_v45  ;;  %v2367_v45 = vld [vmem:[%s2941_s5 + $0x28] sm:$0xff]  }
  0x77   : > { %2203 = vmatprep.mubr.msk.bf16.mxu1 %vm853_vm0, %v404_v46  ;;  %2255 = vmatprep.subr.bf16.mxu0 %v2367_v45 }
  0x78   : > { %2256 = vmatpush3.bf16.msra.mxu0 %v2367_v45 }
  0x79   : > { %2257 = vmatprep.subr.bf16.mxu0 %v2368_v54 }
  0x7c   : > { %2258 = vmatpush3.bf16.msra.mxu0 %v2368_v54 }
  0x7d   : > { %1121 = vmatmul.mubr.bf16.gmra.mxu0 %v416_v55  ;;  %2259 = vmatprep.subr.bf16.mxu0 %v2369_v63 }
  0x7e   : > { %2204 = vmatmul.mubr.msk.bf16.vlgmr.msra.gmra.mxu1 %vm853_vm0, %v411_v56  ;;  %1128 = vmatprep.mubr.bf16.mxu0 %v424_v57 }
  0x7f   : > { %2207 = vmatprep.mubr.msk.bf16.mxu1 %vm853_vm0, %v418_v58  ;;  %2220 = vmatpush3.bf16.msra.mxu1 %v2357_v25 }
  0x80   : > { %2221 = vmatprep.subr.bf16.mxu1 %v2358_v26  ;;  %2260 = vmatpush3.bf16.msra.mxu0 %v2369_v63 }
  0x83   : > { %2222 = vmatpush3.bf16.msra.mxu1 %v2358_v26 }
  0x84   : > { %2223 = vmatprep.subr.bf16.mxu1 %v2359_v27 }
  0x85   : > { %1129 = vmatmul.mubr.bf16.gmra.mxu0 %v423_v3 }
  0x86   : > { %2208 = vmatmul.mubr.msk.bf16.gmra.mxu1 %vm853_vm0, %v425_v4  ;;  %1136 = vmatprep.mubr.bf16.mxu0 %v431_v5 }
  0x87   : > { %2211 = vmatprep.mubr.msk.bf16.mxu1 %vm853_vm0, %v432_v6  ;;  %2224 = vmatpush3.bf16.msra.mxu1 %v2359_v27 }
  0x88   : > { %2225 = vmatprep.subr.bf16.mxu1 %v2360_v28 }
  0x8b   : > { %2226 = vmatpush3.bf16.msra.mxu1 %v2360_v28 }
  0x8c   : > { %2227 = vmatprep.subr.bf16.mxu1 %v2361_v29 }
  0x8d   : > { %1137 = vmatmul.mubr.bf16.gmra.mxu0 %v430_v15 }
  0x8e   : > { %2212 = vmatmul.mubr.msk.bf16.gmra.mxu1 %vm853_vm0, %v439_v16  ;;  %1144 = vmatprep.mubr.bf16.mxu0 %v438_v17 }
  0x8f   : > { %2215 = vmatprep.mubr.msk.bf16.mxu1 %vm853_vm0, %v446_v18  ;;  %2228 = vmatpush3.bf16.msra.mxu1 %v2361_v29 }
  0x90   : > { %2229 = vmatprep.subr.bf16.mxu1 %v2362_v30 }
  0x93   : > { %2230 = vmatpush3.bf16.msra.mxu1 %v2362_v30 }
  0x94   : > { %2231 = vmatprep.subr.bf16.mxu1 %v2363_v31 }
  0x95   : > { %1145 = vmatmul.mubr.bf16.gmra.mxu0 %v437_v23 }
  0x96   : > { %2216 = vmatmul.mubr.msk.bf16.gmra.mxu1 %vm853_vm0, %v453_v24 }
  0x97   : > { %2232 = vmatpush3.bf16.msra.mxu1 %v2363_v31 }
  0x98   : > { %2233 = vmatprep.subr.bf16.mxu1 %v2364_v32 }
  0x9b   : > { %2234 = vmatpush3.bf16.msra.mxu1 %v2364_v32 }
  0xed   : > { %v1984_v33 = vpop.f32.mrf.mxu0 }
  0xee   : > { %v2048_v34 = vpop.f32.mrf.mxu1 }
  0xef   : > { %v1985_v38 = vpop.f32.mrf.mxu0 }
  0xf0   : > { %v1986_v39 = vadd.f32 %v1985_v38, %v1984_v33  ;;  %v2049_v40 = vpop.f32.mrf.mxu1 }
  0xf1   : > { %v2050_v41 = vadd.f32 %v2049_v40, %v2048_v34  ;;  %v1987_v42 = vpop.f32.mrf.mxu0 }
  0xf2   : > { %v913_v43 = vadd.f32 %v1986_v39, %v2739_v37  ;;  %v2051_v44 = vpop.f32.mrf.mxu1 }
  0xf3   : > { %v1988_v46 = vpop.f32.mrf.mxu0 }
  0xf4   : > { %v2745_v47 = vadd.f32 %v2050_v41, %v913_v43  ;;  %v1989_v48 = vadd.f32 %v1988_v46, %v1987_v42  ;;  %v2052_v49 = vpop.f32.mrf.mxu1 }
  0xf5   : > { %v2053_v50 = vadd.f32 %v2052_v49, %v2051_v44  ;;  %v1990_v51 = vpop.f32.mrf.mxu0 }
  0xf6   : > { %v916_v52 = vadd.f32 %v1989_v48, %v2739_v37  ;;  %v2054_v53 = vpop.f32.mrf.mxu1 }
  0xf7   : > { %v1991_v55 = vpop.f32.mrf.mxu0 }
  0xf8   : > { %v2751_v56 = vadd.f32 %v2053_v50, %v916_v52  ;;  %v1992_v57 = vadd.f32 %v1991_v55, %v1990_v51  ;;  %v2055_v58 = vpop.f32.mrf.mxu1 }
  0xf9   : > { %v2056_v59 = vadd.f32 %v2055_v58, %v2054_v53  ;;  %v1993_v60 = vpop.f32.mrf.mxu0 }
  0xfa   : > { %v921_v61 = vadd.f32 %v1992_v57, %v2739_v37  ;;  %v2057_v62 = vpop.f32.mrf.mxu1 }
  0xfb   : > { %v1994_v0 = vpop.f32.mrf.mxu0 }
  0xfc   : > { %v2757_v1 = vadd.f32 %v2056_v59, %v921_v61  ;;  %v1995_v2 = vadd.f32 %v1994_v0, %v1993_v60  ;;  %v2058_v3 = vpop.f32.mrf.mxu1 }
  0xfd   : > { %v2059_v4 = vadd.f32 %v2058_v3, %v2057_v62  ;;  %v1996_v5 = vpop.f32.mrf.mxu0 }
  0xfe   : > { %v924_v6 = vadd.f32 %v1995_v2, %v2739_v37  ;;  %v2060_v7 = vpop.f32.mrf.mxu1 }
  0xff   : > { %v1997_v8 = vpop.f32.mrf.mxu0 }
 0x100   : > { %v2760_v9 = vadd.f32 %v2059_v4, %v924_v6  ;;  %v1998_v10 = vadd.f32 %v1997_v8, %v1996_v5  ;;  %v2061_v11 = vpop.f32.mrf.mxu1 }
 0x101   : > { %v2062_v12 = vadd.f32 %v2061_v11, %v2060_v7  ;;  %v1999_v13 = vpop.f32.mrf.mxu0 }
 0x102   : > { %v929_v14 = vadd.f32 %v1998_v10, %v2739_v37  ;;  %v2063_v15 = vpop.f32.mrf.mxu1 }
 0x103   : > { %v2000_v16 = vpop.f32.mrf.mxu0 }
 0x104   : > { %v2763_v17 = vadd.f32 %v2062_v12, %v929_v14  ;;  %v2001_v18 = vadd.f32 %v2000_v16, %v1999_v13  ;;  %v2064_v19 = vpop.f32.mrf.mxu1 }
 0x105   : > { %v2065_v20 = vadd.f32 %v2064_v19, %v2063_v15  ;;  %v2002_v21 = vpop.f32.mrf.mxu0 }
 0x106   : > { %v932_v22 = vadd.f32 %v2001_v18, %v2739_v37  ;;  %v2066_v23 = vpop.f32.mrf.mxu1 }
 0x107   : > { %v2003_v24 = vpop.f32.mrf.mxu0 }
 0x108   : > { %v2766_v25 = vadd.f32 %v2065_v20, %v932_v22  ;;  %v2004_v26 = vadd.f32 %v2003_v24, %v2002_v21  ;;  %v2067_v27 = vpop.f32.mrf.mxu1 }
 0x109   : > { %v2068_v28 = vadd.f32 %v2067_v27, %v2066_v23  ;;  %v2768_v29 = vpop.f32.mrf.mxu0 }
 0x10a   : > { %v937_v30 = vadd.f32 %v2004_v26, %v2739_v37  ;;  %v2771_v31 = vpop.f32.mrf.mxu1 }
 0x10b   : > { %v2773_v32 = vpop.f32.mrf.mxu0 }
 0x10c   : > { %v2775_v33 = vadd.f32 %v2068_v28, %v937_v30  ;;  %v2777_v34 = vpop.f32.mrf.mxu1 }
 0x10d   : > { %v2008_v35 = vpop.f32.mrf.mxu0 }
 0x10e   : > { %v2072_v36 = vpop.f32.mrf.mxu1 }
 0x10f   : > { %v2009_v38 = vpop.f32.mrf.mxu0 }
 0x110   : > { %v2010_v39 = vadd.f32 %v2009_v38, %v2008_v35  ;;  %v2073_v40 = vpop.f32.mrf.mxu1 }
 0x111   : > { %v2074_v41 = vadd.f32 %v2073_v40, %v2072_v36  ;;  %v2779_v42 = vpop.f32.mrf.mxu0 }
 0x112   : > { %v945_v43 = vadd.f32 %v2010_v39, %v2739_v37  ;;  %v2782_v44 = vpop.f32.mrf.mxu1 }
 0x113   : > { %v2784_v45 = vpop.f32.mrf.mxu0 }
 0x114   : > { %v2786_v46 = vadd.f32 %v2074_v41, %v945_v43  ;;  %v2788_v48 = vpop.f32.mrf.mxu1 }
 0x115   : > { %v2014_v49 = vpop.f32.mrf.mxu0 }
 0x116   : > { %v2078_v50 = vpop.f32.mrf.mxu1 }
 0x117   : > { %v2015_v51 = vpop.f32.mrf.mxu0 }
 0x118   : > { %v2016_v52 = vadd.f32 %v2015_v51, %v2014_v49  ;;  %v2079_v53 = vpop.f32.mrf.mxu1 }
 0x119   : > { %v2080_v54 = vadd.f32 %v2079_v53, %v2078_v50  ;;  %v2790_v55 = vpop.f32.mrf.mxu0 }
 0x11a   : > { %v953_v57 = vadd.f32 %v2016_v52, %v2739_v37  ;;  %v2793_v58 = vpop.f32.mrf.mxu1 }
 0x11b   : > { %v2795_v59 = vpop.f32.mrf.mxu0 }
 0x11c   : > { %v2797_v60 = vadd.f32 %v2080_v54, %v953_v57  ;;  %v2799_v61 = vpop.f32.mrf.mxu1 }
 0x11d   : > { %v2801_v62 = vpop.f32.mrf.mxu0 }
 0x11e   : > { %v2803_v63 = vpop.f32.mrf.mxu1 }
 0x11f   : > { %v2805_v0 = vpop.f32.mrf.mxu0 }
 0x120   : > { %v2807_v2 = vpop.f32.mrf.mxu1 }
 0x121   : > { %v2809_v3 = vpop.f32.mrf.mxu0 }
 0x122   : > { %v2811_v4 = vpop.f32.mrf.mxu1 }
 0x123   : > { %v2813_v5 = vpop.f32.mrf.mxu0 }
 0x124   : > { %v2815_v6 = vpop.f32.mrf.mxu1 }
 0x125   : > { %v2817_v7 = vpop.f32.mrf.mxu0 }
 0x126   : > { %v2819_v8 = vpop.f32.mrf.mxu1 }
 0x127   : > { %2944 = vst [vmem:[#allocation2_spill] sm:$0xff] %v2819_v8  ;;  %v2821_v10 = vpop.f32.mrf.mxu0 }
 0x128   : > { %v2823_v11 = vpop.f32.mrf.mxu1 }
 0x129   : > { %2945 = vst [vmem:[#allocation3_spill] sm:$0xff] %v2823_v11  ;;  %v2825_v12 = vpop.f32.mrf.mxu0 }
 0x12a   : > { %v2827_v13 = vpop.f32.mrf.mxu1 }
 0x12b   : > { %v2829_v14 = vpop.f32.mrf.mxu0 }
 0x12c   : > { %v2831_v15 = vpop.f32.mrf.mxu1 }
 0x12d   : > { %v2112_v16 = vpop.f32.mrf.mxu0 }
 0x12e   : > { %v2833_v18 = vpop.f32.mrf.mxu1 }
 0x12f   : > { %v2113_v19 = vpop.f32.mrf.mxu0 }
 0x130   : > { %v2835_v20 = vpop.f32.mrf.mxu1  ;;  %v2114_v41 = vadd.f32 %v2113_v19, %v2112_v16  ;;  %v2007_v19 = vadd.f32 %v2773_v32, %v2768_v29 }
 0x131   : > { %v2115_v21 = vpop.f32.mrf.mxu0 }
 0x132   : > { %v2837_v22 = vpop.f32.mrf.mxu1 }
 0x133   : > { %v2116_v23 = vpop.f32.mrf.mxu0 }
 0x134   : > { %v2839_v24 = vpop.f32.mrf.mxu1  ;;  %v2117_v51 = vadd.f32 %v2116_v23, %v2115_v21 }
 0x135   : > { %v2118_v26 = vpop.f32.mrf.mxu0 }
 0x136   : > { %v2841_v27 = vpop.f32.mrf.mxu1  ;;  %v1110_v16 = vadd.f32 %v2117_v51, %v2751_v56  ;;  %v2071_v56 = vadd.f32 %v2777_v34, %v2771_v31 }
 0x137   : > { %2946 = vst [vmem:[#allocation4_spill] sm:$0xff] %v2841_v27  ;;  %v2119_v28 = vpop.f32.mrf.mxu0  ;;  %v1107_v27 = vadd.f32 %v2114_v41, %v2745_v47 }
 0x138   : > { %v2843_v30 = vpop.f32.mrf.mxu1  ;;  %v2120_v38 = vadd.f32 %v2119_v28, %v2118_v26 }
 0x139   : > { %2947 = vst [vmem:[#allocation5_spill] sm:$0xff] %v2843_v30  ;;  %v2121_v35 = vpop.f32.mrf.mxu0 }
 0x13a   : > { %v2845_v36 = vpop.f32.mrf.mxu1  ;;  %v1115_v52 = vadd.f32 %v2120_v38, %v2757_v1 }
 0x13b   : > { %2948 = vst [vmem:[#allocation6_spill] sm:$0xff] %v2845_v36  ;;  %v2122_v39 = vpop.f32.mrf.mxu0 }
 0x13c   : > { %v2847_v40 = vpop.f32.mrf.mxu1  ;;  %v2123_v43 = vadd.f32 %v2122_v39, %v2121_v35 }
 0x13d   : > { %v2124_v49 = vpop.f32.mrf.mxu0 }
 0x13e   : > { %v2205_v50 = vpop.f32.mrf.mxu1  ;;  %v1118_v11 = vadd.f32 %v2123_v43, %v2760_v9 }
 0x13f   : > { %v2125_v53 = vpop.f32.mrf.mxu0  ;;  %v1212_v57 = vadd.f32 %v2205_v50, %v1115_v52 }
 0x140   : > { %v1203_v54 = vpop.f32.mrf.mxu1  ;;  %v2126_v1 = vadd.f32 %v2125_v53, %v2124_v49 }
 0x141   : > { %v2127_v30 = vpop.f32.mrf.mxu0  ;;  %v1204_v26 = vadd.f32 %v1203_v54, %v1107_v27  ;;  %v1268_v23 = vmax.f32 %v1212_v57, 0.0 }
 0x142   : > { %v2206_v36 = vpop.f32.mrf.mxu1  ;;  %v1123_v32 = vadd.f32 %v2126_v1, %v2763_v17 }
 0x143   : > { %v1215_v28 = vadd.f32 %v2206_v36, %v1118_v11  ;;  %v2128_v8 = vpop.f32.mrf.mxu0  ;;  %v1266_v47 = vmax.f32 %v1204_v26, 0.0  ;;  %v940_v11 = vadd.f32 %v2007_v19, %v2739_v37  ;;  %v2013_v26 = vadd.f32 %v2784_v45, %v2779_v42 }
 0x144   : > { %v1206_v21 = vpop.f32.mrf.mxu1  ;;  %v2129_v52 = vadd.f32 %v2128_v8, %v2127_v30  ;;  %v2025_v45 = vadd.f32 %v2813_v5, %v2809_v3  ;;  %v2089_v5 = vadd.f32 %v2815_v6, %v2811_v4  ;;  %v2031_v4 = vadd.f32 %v2829_v14, %v2825_v12 }
 0x145   : > { %v1269_v35 = vmax.f32 %v1215_v28, 0.0  ;;  %v1207_v38 = vadd.f32 %v1206_v21, %v1110_v16  ;;  %v2130_v39 = vpop.f32.mrf.mxu0  ;;  %v1037_v30 = vadd.f32 %v2071_v56, %v940_v11  ;;  %v2019_v11 = vadd.f32 %v2795_v59, %v2790_v55 }
 0x146   : > { %v2209_v50 = vpop.f32.mrf.mxu1  ;;  %v1126_v8 = vadd.f32 %v2129_v52, %v2766_v25  ;;  %v2077_v25 = vadd.f32 %v2788_v48, %v2782_v44  ;;  %v2022_v56 = vadd.f32 %v2805_v0, %v2801_v62  ;;  %v964_v3 = vadd.f32 %v2025_v45, %v2739_v37 }
 0x147   : > { %v1283_v41 = vpack.c.bf16 %v1269_v35, %v1268_v23  ;;  %v1267_v9 = vmax.f32 %v1207_v38, 0.0  ;;  %v2131_v43 = vpop.f32.mrf.mxu0  ;;  %v948_v35 = vadd.f32 %v2013_v26, %v2739_v37  ;;  %v956_v62 = vadd.f32 %v2019_v11, %v2739_v37 }
 0x148   : > { %v2132_v27 = vadd.f32 %v2131_v43, %v2130_v39  ;;  %v1219_v36 = vpop.f32.mrf.mxu1  ;;  %v961_v0 = vadd.f32 %v2022_v56, %v2739_v37  ;;  %v2028_v26 = vadd.f32 %v2821_v10, %v2817_v7  ;;  %v972_v14 = vadd.f32 %v2031_v4, %v2739_v37 }
 0x149   : > { %v1282_v29 = vpack.c.bf16 %v1267_v9, %v1266_v47  ;;  %v2133_v49 = vpop.f32.mrf.mxu0  ;;  %v1220_v54 = vadd.f32 %v1219_v36, %v1123_v32  ;;  %v1045_v48 = vadd.f32 %v2077_v25, %v948_v35 }
 0x14a   : > { %v1131_v51 = vadd.f32 %v2132_v27, %v2775_v33  ;;  %v2210_v53 = vpop.f32.mrf.mxu1 }
 0x14b   : > { %2235 = vmatprep.mubr.bf16.mxu1 %v1282_v29  ;;  %v2134_v57 = vpop.f32.mrf.mxu0  ;;  %v1270_v33 = vmax.f32 %v1220_v54, 0.0 }
 0x14c   : > { %v2135_v28 = vadd.f32 %v2134_v57, %v2133_v49  ;;  %v1222_v31 = vpop.f32.mrf.mxu1  ;;  %2236 = vmatmul.mubr.bf16.vlgmr.msra.gmra.mxu1 %v1283_v41  ;;  %v1228_v19 = vadd.f32 %v2209_v50, %v1131_v51  ;;  %v2086_v51 = vadd.f32 %v2807_v2, %v2803_v63  ;;  %v1061_v57 = vadd.f32 %v2089_v5, %v964_v3  ;;  %v2371_v3 = vld [vmem:[%s2941_s5 + $0x8] sm:$0xff]   ;;  %v2372_v5 = vld [vmem:[%s2941_s5] sm:$0xff]  }
 0x14d   : > { %v1223_v34 = vadd.f32 %v1222_v31, %v1126_v8  ;;  %v2136_v16 = vpop.f32.mrf.mxu0  ;;  %v2150_v8 = vadd.f32 %v2835_v20, %v2833_v18 }
 0x14e   : > { %v1134_v17 = vadd.f32 %v2135_v28, %v1037_v30  ;;  %v2863_v21 = vpop.f32.mrf.mxu1  ;;  %v1272_v50 = vmax.f32 %v1228_v19, 0.0  ;;  %v1058_v31 = vadd.f32 %v2086_v51, %v961_v0 }
 0x14f   : > { %v1271_v23 = vmax.f32 %v1223_v34, 0.0  ;;  %v2137_v1 = vpop.f32.mrf.mxu0 }
 0x150   : > { %v1231_v38 = vadd.f32 %v2210_v53, %v1134_v17  ;;  %v2138_v39 = vadd.f32 %v2137_v1, %v2136_v16  ;;  %v1235_v42 = vpop.f32.mrf.mxu1  ;;  %v2153_v53 = vadd.f32 %v2839_v24, %v2837_v22  ;;  %v2095_v16 = vadd.f32 %v2831_v15, %v2827_v13  ;;  %v2949_v17 = vld [vmem:[#allocation2_spill] sm:$0xff]  ;;  %v2952_v13 = vld [vmem:[#allocation4_spill] sm:$0xff]  ;;  %v2953_v15 = vld [vmem:[#allocation5_spill] sm:$0xff] }
 0x151   : > { %v1284_v47 = vpack.c.bf16 %v1271_v23, %v1270_v33  ;;  %v2139_v41 = vpop.f32.mrf.mxu0  ;;  %v2950_v33 = vld [vmem:[#allocation3_spill] sm:$0xff]  ;;  %v1155_v10 = vadd.f32 %v2150_v8, %v1058_v31  ;;  %v2951_v1 = vld [vmem:[#allocation6_spill] sm:$0xff]  ;;  %v2156_v45 = vadd.f32 %v2953_v15, %v2952_v13 }
 0x152   : > { %v1273_v52 = vmax.f32 %v1231_v38, 0.0  ;;  %v1139_v9 = vadd.f32 %v2138_v39, %v2786_v46  ;;  %v2214_v43 = vpop.f32.mrf.mxu1  ;;  %v2083_v46 = vadd.f32 %v2799_v61, %v2793_v58  ;;  %v1158_v12 = vadd.f32 %v2153_v53, %v1061_v57 }
 0x153   : > { %2239 = vmatprep.mubr.bf16.mxu1 %v1284_v47  ;;  %v2140_v44 = vpop.f32.mrf.mxu0  ;;  %v2092_v7 = vadd.f32 %v2950_v33, %v2949_v17  ;;  %v2159_v35 = vadd.f32 %v2847_v40, %v2951_v1 }
 0x154   : > { %v2141_v27 = vadd.f32 %v2140_v44, %v2139_v41  ;;  %v1238_v36 = vpop.f32.mrf.mxu1  ;;  %v1285_v29 = vpack.c.bf16 %v1273_v52, %v1272_v50  ;;  %v1236_v49 = vadd.f32 %v1235_v42, %v1139_v9  ;;  %v1053_v24 = vadd.f32 %v2083_v46, %v956_v62 }
 0x155   : > { %v2142_v32 = vpop.f32.mrf.mxu0  ;;  %v1069_v42 = vadd.f32 %v2095_v16, %v972_v14 }
 0x156   : > { %v1142_v55 = vadd.f32 %v2141_v27, %v1045_v48  ;;  %v2217_v59 = vpop.f32.mrf.mxu1  ;;  %2240 = vmatmul.mubr.bf16.gmra.mxu1 %v1285_v29  ;;  %v1274_v28 = vmax.f32 %v1236_v49, 0.0  ;;  %v1869_v49 = vld [vmem:[%s2940_s4] ss:$0 sm:$0xff] }
 0x157   : > { %v2143_v54 = vpop.f32.mrf.mxu0  ;;  %v1166_v9 = vadd.f32 %v2159_v35, %v1069_v42 }
 0x158   : > { %v1239_v6 = vadd.f32 %v1238_v36, %v1142_v55  ;;  %v2144_v58 = vadd.f32 %v2143_v54, %v2142_v32  ;;  %v1251_v61 = vpop.f32.mrf.mxu1 }
 0x159   : > { %v2145_v30 = vpop.f32.mrf.mxu0  ;;  %v1252_v39 = vadd.f32 %v1251_v61, %v1155_v10 }
 0x15a   : > { %v1275_v63 = vmax.f32 %v1239_v6, 0.0  ;;  %v1147_v2 = vadd.f32 %v2144_v58, %v2797_v60  ;;  %v2218_v22 = vpop.f32.mrf.mxu1  ;;  %v969_v60 = vadd.f32 %v2028_v26, %v2739_v37 }
 0x15b   : > { %v2146_v34 = vpop.f32.mrf.mxu0  ;;  %v1278_v56 = vmax.f32 %v1252_v39, 0.0  ;;  %v1263_v44 = vadd.f32 %v2218_v22, %v1166_v9 }
 0x15c   : > { %v1286_v19 = vpack.c.bf16 %v1275_v63, %v1274_v28  ;;  %v2147_v18 = vadd.f32 %v2146_v34, %v2145_v30  ;;  %v1254_v20 = vpop.f32.mrf.mxu1  ;;  %v1244_v25 = vadd.f32 %v2863_v21, %v1147_v2  ;;  %v1066_v50 = vadd.f32 %v2092_v7, %v969_v60 }
 0x15d   : > { %v1255_v23 = vadd.f32 %v1254_v20, %v1158_v12  ;;  %v1281_v21 = vmax.f32 %v1263_v44, 0.0 }
 0x15e   : > { %v1150_v38 = vadd.f32 %v2147_v18, %v1053_v24  ;;  %2243 = vmatprep.mubr.bf16.mxu1 %v1286_v19  ;;  %v1276_v52 = vmax.f32 %v1244_v25, 0.0  ;;  %v1163_v37 = vadd.f32 %v2156_v45, %v1066_v50 }
 0x15f   : > { %v1279_v41 = vmax.f32 %v1255_v23, 0.0 }
 0x160   : > { %v1247_v47 = vadd.f32 %v2214_v43, %v1150_v38  ;;  %v1260_v27 = vadd.f32 %v2217_v59, %v1163_v37  ;;  %v2370_v43 = vld [vmem:[%s2941_s5 + $0x10] sm:$0xff]  }
 0x161   : > { %v1288_v40 = vpack.c.bf16 %v1279_v41, %v1278_v56  ;;  %2261 = vmatprep.subr.bf16.mxu0 %v2370_v43 }
 0x162   : > { %v1277_v11 = vmax.f32 %v1247_v47, 0.0  ;;  %v1280_v36 = vmax.f32 %v1260_v27, 0.0  ;;  %2262 = vmatpush3.bf16.msra.mxu0 %v2370_v43 }
 0x163   : > { %2263 = vmatprep.subr.bf16.mxu0 %v2371_v3 }
 0x164   : > { %v1287_v48 = vpack.c.bf16 %v1277_v11, %v1276_v52  ;;  %v1289_v29 = vpack.c.bf16 %v1281_v21, %v1280_v36  ;;  %v1878_v21 = vld [vmem:[%s2942_s6] ss:$0 sm:$0xff] }
 0x166   : > { %2244 = vmatmul.mubr.bf16.gmra.mxu1 %v1287_v48  ;;  %2264 = vmatpush3.bf16.msra.mxu0 %v2371_v3 }
 0x167   : > { %2247 = vmatprep.mubr.bf16.mxu1 %v1288_v40  ;;  %2265 = vmatprep.subr.bf16.mxu0 %v2372_v5 }
 0x16a   : > { %2266 = vmatpush3.bf16.msra.mxu0 %v2372_v5 }
 0x16e   : > { %2248 = vmatmul.mubr.bf16.gmra.mxu1 %v1289_v29 }
 0x20c   : > { %v2237_v32 = vpop.f32.mrf.mxu1 }
 0x20d   : > { %v1404_v0 = vadd.f32 %v2237_v32, %v1869_v49 }
 0x20e   : > { %v1395_v46 = vpop.f32.mrf.mxu1 }
 0x20f   : > { %v1396_v59 = vadd.f32 %v1869_v49, %v1395_v46  ;;  %v1460_v58 = vmax.f32 %v1404_v0, 0.0 }
 0x210   : > { %v2238_v55 = vpop.f32.mrf.mxu1 }
 0x211   : > { %v1407_v62 = vadd.f32 %v2238_v55, %v1869_v49  ;;  %v1458_v4 = vmax.f32 %v1396_v59, 0.0 }
 0x212   : > { %v1398_v51 = vpop.f32.mrf.mxu1 }
 0x213   : > { %v1399_v53 = vadd.f32 %v1869_v49, %v1398_v51  ;;  %v1461_v54 = vmax.f32 %v1407_v62, 0.0 }
 0x215   : > { %v1459_v6 = vmax.f32 %v1399_v53, 0.0  ;;  %v1475_v8 = vpack.c.bf16 %v1461_v54, %v1460_v58 }
 0x216   : > { %v2241_v61 = vpop.f32.mrf.mxu1 }
 0x217   : > { %v1474_v57 = vpack.c.bf16 %v1459_v6, %v1458_v4  ;;  %v1420_v2 = vadd.f32 %v2241_v61, %v1869_v49 }
 0x218   : > { %v1411_v30 = vpop.f32.mrf.mxu1 }
 0x219   : > { %2267 = vmatprep.mubr.bf16.mxu0 %v1474_v57  ;;  %v1412_v28 = vadd.f32 %v1869_v49, %v1411_v30  ;;  %v1464_v14 = vmax.f32 %v1420_v2, 0.0 }
 0x21a   : > { %2268 = vmatmul.mubr.bf16.vlgmr.msra.gmra.mxu0 %v1475_v8  ;;  %v2242_v26 = vpop.f32.mrf.mxu1 }
 0x21b   : > { %v1423_v63 = vadd.f32 %v2242_v26, %v1869_v49  ;;  %v1462_v34 = vmax.f32 %v1412_v28, 0.0 }
 0x21c   : > { %v1414_v22 = vpop.f32.mrf.mxu1 }
 0x21d   : > { %v1415_v24 = vadd.f32 %v1869_v49, %v1414_v22  ;;  %v1465_v31 = vmax.f32 %v1423_v63, 0.0 }
 0x21f   : > { %v1463_v12 = vmax.f32 %v1415_v24, 0.0  ;;  %v1477_v19 = vpack.c.bf16 %v1465_v31, %v1464_v14 }
 0x221   : > { %v1476_v16 = vpack.c.bf16 %v1463_v12, %v1462_v34 }
 0x223   : > { %2271 = vmatprep.mubr.bf16.mxu0 %v1476_v16 }
 0x224   : > { %2272 = vmatmul.mubr.bf16.gmra.mxu0 %v1477_v19 }
 0x226   : > { %v2245_v18 = vpop.f32.mrf.mxu1 }
 0x227   : > { %v1436_v10 = vadd.f32 %v2245_v18, %v1869_v49 }
 0x228   : > { %v1427_v20 = vpop.f32.mrf.mxu1 }
 0x229   : > { %v1428_v33 = vadd.f32 %v1869_v49, %v1427_v20  ;;  %v1468_v39 = vmax.f32 %v1436_v10, 0.0 }
 0x22a   : > { %v2246_v17 = vpop.f32.mrf.mxu1 }
 0x22b   : > { %v1439_v7 = vadd.f32 %v2246_v17, %v1869_v49  ;;  %v1466_v25 = vmax.f32 %v1428_v33, 0.0 }
 0x22c   : > { %v1430_v23 = vpop.f32.mrf.mxu1 }
 0x22d   : > { %v1431_v60 = vadd.f32 %v1869_v49, %v1430_v23  ;;  %v1469_v1 = vmax.f32 %v1439_v7, 0.0 }
 0x22e   : > { %v2249_v35 = vpop.f32.mrf.mxu1 }
 0x22f   : > { %v1467_v38 = vmax.f32 %v1431_v60, 0.0  ;;  %v1479_v15 = vpack.c.bf16 %v1469_v1, %v1468_v39  ;;  %v1452_v50 = vadd.f32 %v2249_v35, %v1869_v49 }
 0x230   : > { %v1443_v42 = vpop.f32.mrf.mxu1 }
 0x231   : > { %v1478_v13 = vpack.c.bf16 %v1467_v38, %v1466_v25  ;;  %v1444_v47 = vadd.f32 %v1869_v49, %v1443_v42  ;;  %v1472_v44 = vmax.f32 %v1452_v50, 0.0 }
 0x232   : > { %v2250_v45 = vpop.f32.mrf.mxu1 }
 0x233   : > { %v1455_v41 = vadd.f32 %v2250_v45, %v1869_v49  ;;  %2275 = vmatprep.mubr.bf16.mxu0 %v1478_v13  ;;  %v1470_v56 = vmax.f32 %v1444_v47, 0.0 }
 0x234   : > { %v1446_v52 = vpop.f32.mrf.mxu1  ;;  %2276 = vmatmul.mubr.bf16.gmra.mxu0 %v1479_v15 }
 0x235   : > { %v1447_v9 = vadd.f32 %v1869_v49, %v1446_v52  ;;  %v1473_v11 = vmax.f32 %v1455_v41, 0.0 }
 0x237   : > { %v1471_v37 = vmax.f32 %v1447_v9, 0.0  ;;  %v1481_v40 = vpack.c.bf16 %v1473_v11, %v1472_v44 }
 0x239   : > { %v1480_v48 = vpack.c.bf16 %v1471_v37, %v1470_v56 }
 0x23b   : > { %2279 = vmatprep.mubr.bf16.mxu0 %v1480_v48 }
 0x23c   : > { %2280 = vmatmul.mubr.bf16.gmra.mxu0 %v1481_v40 }
 0x2da   : > { %v2269_v27 = vpop.f32.mrf.mxu0 }
 0x2db   : > { %v1596_v29 = vadd.f32 %v2269_v27, %v1878_v21 }
 0x2dc   : > { %v1587_v36 = vpop.f32.mrf.mxu0 }
 0x2dd   : > { %v1588_v3 = vadd.f32 %v1878_v21, %v1587_v36  ;;  %v1652_v46 = vmax.f32 %v1596_v29, 0.0 }
 0x2de   : > { %v2270_v43 = vpop.f32.mrf.mxu0 }
 0x2df   : > { %v1599_v5 = vadd.f32 %v2270_v43, %v1878_v21  ;;  %v1650_v59 = vmax.f32 %v1588_v3, 0.0 }
 0x2e0   : > { %v1590_v32 = vpop.f32.mrf.mxu0 }
 0x2e1   : > { %v1653_v49 = vmax.f32 %v1599_v5, 0.0  ;;  %v1591_v55 = vadd.f32 %v1878_v21, %v1590_v32 }
 0x2e3   : > { %v1929_v62 = vpack.c.bf16 %v1653_v49, %v1652_v46  ;;  %v1651_v0 = vmax.f32 %v1591_v55, 0.0 }
 0x2e4   : > { %v2273_v51 = vpop.f32.mrf.mxu0 }
 0x2e5   : > { %1961 = vst [vmem:[%s2923_s21 + $0x8] sm:$0xff] %v1929_v62   ;;  %v1924_v53 = vpack.c.bf16 %v1651_v0, %v1650_v59  ;;  %v1612_v4 = vadd.f32 %v2273_v51, %v1878_v21 }
 0x2e6   : > { %v1603_v54 = vpop.f32.mrf.mxu0 }
 0x2e7   : > { %1925 = vst [vmem:[%s2923_s21] sm:$0xff] %v1924_v53   ;;  %v1604_v58 = vadd.f32 %v1878_v21, %v1603_v54  ;;  %v1656_v8 = vmax.f32 %v1612_v4, 0.0 }
 0x2e8   : > { %v2274_v6 = vpop.f32.mrf.mxu0 }
 0x2e9   : > { %v1615_v61 = vadd.f32 %v2274_v6, %v1878_v21  ;;  %v1654_v28 = vmax.f32 %v1604_v58, 0.0 }
 0x2ea   : > { %v1606_v57 = vpop.f32.mrf.mxu0 }
 0x2eb   : > { %v1657_v30 = vmax.f32 %v1615_v61, 0.0  ;;  %v1607_v26 = vadd.f32 %v1878_v21, %v1606_v57 }
 0x2ed   : > { %v1939_v63 = vpack.c.bf16 %v1657_v30, %v1656_v8  ;;  %v1655_v2 = vmax.f32 %v1607_v26, 0.0 }
 0x2ef   : > { %1963 = vst [vmem:[%s2923_s21 + $0x18] sm:$0xff] %v1939_v63   ;;  %v1934_v22 = vpack.c.bf16 %v1655_v2, %v1654_v28 }
 0x2f1   : > { %1962 = vst [vmem:[%s2923_s21 + $0x10] sm:$0xff] %v1934_v22  }
 0x2f4   : > { %v2277_v24 = vpop.f32.mrf.mxu0 }
 0x2f5   : > { %v1628_v34 = vadd.f32 %v2277_v24, %v1878_v21 }
 0x2f6   : > { %v1619_v31 = vpop.f32.mrf.mxu0 }
 0x2f7   : > { %v1620_v14 = vadd.f32 %v1878_v21, %v1619_v31  ;;  %v1660_v18 = vmax.f32 %v1628_v34, 0.0 }
 0x2f8   : > { %v2278_v12 = vpop.f32.mrf.mxu0 }
 0x2f9   : > { %v1631_v16 = vadd.f32 %v2278_v12, %v1878_v21  ;;  %v1658_v7 = vmax.f32 %v1620_v14, 0.0 }
 0x2fa   : > { %v1622_v19 = vpop.f32.mrf.mxu0 }
 0x2fb   : > { %v1661_v20 = vmax.f32 %v1631_v16, 0.0  ;;  %v1623_v17 = vadd.f32 %v1878_v21, %v1622_v19 }
 0x2fc   : > { %v2281_v33 = vpop.f32.mrf.mxu0 }
 0x2fd   : > { %v1949_v10 = vpack.c.bf16 %v1661_v20, %v1660_v18  ;;  %v1659_v23 = vmax.f32 %v1623_v17, 0.0  ;;  %v1644_v35 = vadd.f32 %v2281_v33, %v1878_v21 }
 0x2fe   : > { %v1635_v60 = vpop.f32.mrf.mxu0 }
 0x2ff   : > { %1965 = vst [vmem:[%s2923_s21 + $0x28] sm:$0xff] %v1949_v10   ;;  %v1944_v1 = vpack.c.bf16 %v1659_v23, %v1658_v7  ;;  %v1636_v38 = vadd.f32 %v1878_v21, %v1635_v60  ;;  %v1664_v13 = vmax.f32 %v1644_v35, 0.0 }
 0x300   : > { %v2282_v25 = vpop.f32.mrf.mxu0 }
 0x301   : > { %1964 = vst [vmem:[%s2923_s21 + $0x20] sm:$0xff] %v1944_v1   ;;  %v1647_v39 = vadd.f32 %v2282_v25, %v1878_v21  ;;  %v1662_v47 = vmax.f32 %v1636_v38, 0.0 }
 0x302   : > { %v1638_v42 = vpop.f32.mrf.mxu0 }
 0x303   : > { %v1665_v15 = vmax.f32 %v1647_v39, 0.0  ;;  %v1639_v45 = vadd.f32 %v1878_v21, %v1638_v42 }
 0x305   : > { %v1959_v41 = vpack.c.bf16 %v1665_v15, %v1664_v13  ;;  %v1663_v50 = vmax.f32 %v1639_v45, 0.0 }
 0x307   : > { %1967 = vst [vmem:[%s2923_s21 + $0x38] sm:$0xff] %v1959_v41   ;;  %v1954_v52 = vpack.c.bf16 %v1663_v50, %v1662_v47 }
 0x309   : > { %1966 = vst [vmem:[%s2923_s21 + $0x30] sm:$0xff] %v1954_v52  }
 0x30a PF: > { %s17_s24 = sadd.s32 1, %s2379_s24  }
 0x30b   : > { %p14_p4 = scmp.ge.s32.totalorder %s17_s24, 6  }
 0x30d   :  { %16 = sbr.rel (!%p14_p4) target bundleno = 1 (0x1), region = 78 }

</bundles_post_ra>
